<compile_context>
chip_gen: v7x
topology: tpu7x:2x2x1
jax: 0.10.0
libtpu: 0.0.40
codegen_flags: <defaults>
</compile_context>

<pallas_src>
import functools

import jax
import jax.numpy as jnp
from jax.experimental import pallas as pl
from jax.experimental.pallas import tpu as pltpu


LANE = 128          # TPU lane width
MAX_SUBLANE_TILE = 512  # ~0.75 MB per (1, 3, 512, 128) f32 block


def _gray_mean_kernel(inv_hw, img_ref, mean_ref, acc_ref):
    """Pass 1: per-image mean of the grayscale image.

    img_ref : VMEM (1, 3, T, 128)   one spatial tile of one image
    mean_ref: VMEM (1, 8, 128) f32  per-image mean broadcast into the block
    acc_ref : VMEM (1, 128) f32     per-lane running partial sums
    """
    t = pl.program_id(1)

    @pl.when(t == 0)
    def _():
        acc_ref[...] = jnp.zeros_like(acc_ref)

    # Weighted per-channel sums on dense (T, 128) tiles; force f32 accumulation.
    r = img_ref[0, 0].astype(jnp.float32)
    g = img_ref[0, 1].astype(jnp.float32)
    b = img_ref[0, 2].astype(jnp.float32)
    w = 0.2989 * r + 0.587 * g + 0.114 * b            # (T, 128)
    acc_ref[...] += jnp.sum(w, axis=0, keepdims=True)  # (1, 128)

    @pl.when(t == pl.num_programs(1) - 1)
    def _():
        total = jnp.sum(acc_ref[...])                  # scalar (f32)
        mean_ref[...] = jnp.full(mean_ref.shape, total * inv_hw,
                                 dtype=mean_ref.dtype)


def _blend_kernel(factor_ref, mean_ref, img_ref, out_ref):
    """Pass 2: elementwise blend + clamp.

    factor_ref: SMEM (1,)  f32
    mean_ref  : SMEM (N,)  f32   per-image gray means
    img_ref   : VMEM (1, 3, T, 128)
    out_ref   : VMEM (1, 3, T, 128)
    """
    i = pl.program_id(0)
    f = factor_ref[0]
    bias = (1.0 - f) * mean_ref[i]          # hoisted scalar
    img = img_ref[...]                      # single load of the tile
    out_ref[...] = jnp.clip(f * img + bias, 0.0, 1.0).astype(out_ref.dtype)


def _pick_tile(r0, max_t=MAX_SUBLANE_TILE):
    """Pick sublane tile T and padded row count R_pad for R0 rows of 128 lanes."""
    if r0 <= max_t:
        return r0, r0                        # single tile == full dim (always legal)
    # Prefer a multiple-of-8 divisor of r0 (no padding, no extra HBM traffic).
    for t in range(max_t - (max_t % 8), 7, -8):
        if r0 % t == 0:
            return t, r0
    # Otherwise pad rows up to a multiple of max_t (zeros don't affect the sum).
    t = max_t
    return t, -(-r0 // t) * t


@jax.jit
def contrast_forward(image, mask, factor):
    """image: (N, 3, H, W) float in [0, 1]; factor: scalar. Returns (image', mask)."""
    N, C, H, W = image.shape
    assert C == 3, "adjust_contrast grayscale path implemented for 3-channel images"
    HW = H * W

    r0 = -(-HW // LANE)                       # ceil(HW / 128)
    T, r_pad = _pick_tile(r0)
    num_tiles = r_pad // T
    pad = r_pad * LANE - HW

    img_flat = image.reshape(N, C, HW)
    if pad:
        img_flat = jnp.pad(img_flat, ((0, 0), (0, 0), (0, pad)))
    img4 = img_flat.reshape(N, C, r_pad, LANE)

    # ---- pass 1: per-image gray mean (reduction over spatial tiles) ----
    mean_blk = pl.pallas_call(
        functools.partial(_gray_mean_kernel, 1.0 / float(HW)),
        out_shape=jax.ShapeDtypeStruct((N, 8, LANE), jnp.float32),
        grid_spec=pltpu.PrefetchScalarGridSpec(
            num_scalar_prefetch=0,
            grid=(N, num_tiles),
            in_specs=[pl.BlockSpec((1, C, T, LANE), lambda i, t: (i, 0, t, 0))],
            out_specs=pl.BlockSpec((1, 8, LANE), lambda i, t: (i, 0, 0)),
            scratch_shapes=[pltpu.VMEM((1, LANE), jnp.float32)],
        ),
        compiler_params=pltpu.CompilerParams(
            dimension_semantics=("parallel", "arbitrary")),
    )(img4)
    means = mean_blk[:, 0, 0]                 # (N,) f32

    # ---- pass 2: streaming elementwise blend + clamp ----
    factor_arr = jnp.asarray(factor, dtype=jnp.float32).reshape(1)
    out4 = pl.pallas_call(
        _blend_kernel,
        out_shape=jax.ShapeDtypeStruct((N, C, r_pad, LANE), image.dtype),
        grid_spec=pl.GridSpec(
            grid=(N, num_tiles),
            in_specs=[
                pl.BlockSpec(memory_space=pltpu.SMEM),                     # factor
                pl.BlockSpec(memory_space=pltpu.SMEM),                     # means
                pl.BlockSpec((1, C, T, LANE), lambda i, t: (i, 0, t, 0)),  # image tile
            ],
            out_specs=pl.BlockSpec((1, C, T, LANE), lambda i, t: (i, 0, t, 0)),
        ),
        compiler_params=pltpu.CompilerParams(
            dimension_semantics=("parallel", "parallel")),
    )(factor_arr, means, img4)

    out_flat = out4.reshape(N, C, r_pad * LANE)
    if pad:
        out_flat = out_flat[:, :, :HW]
    return out_flat.reshape(N, C, H, W), mask


if __name__ == "__main__":
    key = jax.random.PRNGKey(0)
    k_img, k_mask = jax.random.split(key)

    N, C, H, W = 2, 3, 16, 16
    image = jax.random.uniform(k_img, (N, C, H, W), dtype=jnp.float32)
    mask = (jax.random.uniform(k_mask, (N, 1, H, W)) > 0.5).astype(jnp.float32)

    # Deterministic factor (the module would sample in [min_factor, max_factor]).
    factor = 1.7

    out_img, out_mask = contrast_forward(image, mask, factor)
    jax.block_until_ready(out_img)
    jax.block_until_ready(out_mask)

    # Pure-JAX reference check (torchvision adjust_contrast semantics).
    gray = 0.2989 * image[:, 0] + 0.587 * image[:, 1] + 0.114 * image[:, 2]
    mean = gray.mean(axis=(-2, -1), keepdims=True)[:, None]  # (N,1,1,1)
    ref = jnp.clip(factor * image + (1.0 - factor) * mean, 0.0, 1.0)
    assert jnp.allclose(out_img, ref, atol=1e-5), "mismatch vs reference"
    assert jnp.array_equal(out_mask, mask)

    print("KERNEL_OK")
</pallas_src>

<mosaic_0001>
module attributes {stable_mosaic.version = 11 : i64} {
  func.func @_blend_kernel(%arg0: i32, %arg1: i32, %arg2: memref<1xf32, #tpu.memory_space<smem>>, %arg3: memref<2xf32, #tpu.memory_space<smem>>, %arg4: memref<1x3x2x128xf32, #tpu.memory_space<vmem>>, %arg5: memref<1x3x2x128xf32, #tpu.memory_space<vmem>>) attributes {dimension_semantics = [#tpu.dimension_semantics<parallel>, #tpu.dimension_semantics<parallel>], iteration_bounds = array<i64: 2, 1>, scalar_prefetch = 0 : i64, scratch_operands = 0 : i64, tpu.core_type = #tpu.core_type<tc>, window_params = [{transform_indices = @transform_0, window_bounds = array<i64: 1>}, {transform_indices = @transform_1, window_bounds = array<i64: 2>}, {transform_indices = @transform_2, window_bounds = array<i64: 1, 3, 2, 128>}, {transform_indices = @transform_3, window_bounds = array<i64: 1, 3, 2, 128>}]} {
    %c0 = arith.constant 0 : index
    %0 = memref.load %arg2[%c0] : memref<1xf32, #tpu.memory_space<smem>>
    %cst = arith.constant 1.000000e+00 : f32
    %1 = arith.subf %cst, %0 : f32
    %2 = arith.index_cast %arg0 : i32 to index
    %3 = memref.load %arg3[%2] : memref<2xf32, #tpu.memory_space<smem>>
    %4 = arith.mulf %1, %3 : f32
    %c0_0 = arith.constant 0 : index
    %c0_1 = arith.constant 0 : index
    %c0_2 = arith.constant 0 : index
    %c0_3 = arith.constant 0 : index
    %5 = vector.load %arg4[%c0_0, %c0_1, %c0_2, %c0_3] : memref<1x3x2x128xf32, #tpu.memory_space<vmem>>, vector<1x3x2x128xf32>
    %6 = vector.broadcast %0 : f32 to vector<1x3x2x128xf32>
    %7 = arith.mulf %6, %5 : vector<1x3x2x128xf32>
    %8 = vector.broadcast %4 : f32 to vector<1x3x2x128xf32>
    %9 = arith.addf %7, %8 : vector<1x3x2x128xf32>
    %cst_4 = arith.constant 0.000000e+00 : f32
    %cst_5 = arith.constant 1.000000e+00 : f32
    %10 = vector.broadcast %cst_4 : f32 to vector<1x3x2x128xf32>
    %11 = arith.maximumf %10, %9 : vector<1x3x2x128xf32>
    %12 = vector.broadcast %cst_5 : f32 to vector<1x3x2x128xf32>
    %13 = arith.minimumf %12, %11 : vector<1x3x2x128xf32>
    %c0_6 = arith.constant 0 : index
    %c0_7 = arith.constant 0 : index
    %c0_8 = arith.constant 0 : index
    %c0_9 = arith.constant 0 : index
    %14 = vector.load %arg5[%c0_6, %c0_7, %c0_8, %c0_9] : memref<1x3x2x128xf32, #tpu.memory_space<vmem>>, vector<1x3x2x128xf32>
    tpu.vector_store %arg5[%c0_6, %c0_7, %c0_8, %c0_9], %13 {strides = array<i32>} : memref<1x3x2x128xf32, #tpu.memory_space<vmem>>, vector<1x3x2x128xf32>,
    return
  }
  func.func @transform_0(%arg0: i32, %arg1: i32) -> i32 {
    %c0_i32 = arith.constant 0 : i32
    %c0_i32_0 = arith.constant 0 : i32
    return %c0_i32 : i32
  }
  func.func @transform_1(%arg0: i32, %arg1: i32) -> i32 {
    %c0_i32 = arith.constant 0 : i32
    %c0_i32_0 = arith.constant 0 : i32
    return %c0_i32 : i32
  }
  func.func @transform_2(%arg0: i32, %arg1: i32) -> (i32, i32, i32, i32) {
    %c0_i32 = arith.constant 0 : i32
    %c0_i32_0 = arith.constant 0 : i32
    %c0_i32_1 = arith.constant 0 : i32
    return %arg0, %c0_i32, %arg1, %c0_i32_0 : i32, i32, i32, i32
  }
  func.func @transform_3(%arg0: i32, %arg1: i32) -> (i32, i32, i32, i32) {
    %c0_i32 = arith.constant 0 : i32
    %c0_i32_0 = arith.constant 0 : i32
    %c0_i32_1 = arith.constant 0 : i32
    return %arg0, %c0_i32, %arg1, %c0_i32_0 : i32, i32, i32, i32
  }
}

module attributes {stable_mosaic.version = 11 : i64} {
  func.func @_gray_mean_kernel(%arg0: i32, %arg1: i32, %arg2: memref<1x3x2x128xf32, #tpu.memory_space<vmem>>, %arg3: memref<1x8x128xf32, #tpu.memory_space<vmem>>, %arg4: memref<1x128xf32, #tpu.memory_space<vmem>>) attributes {dimension_semantics = [#tpu.dimension_semantics<parallel>, #tpu.dimension_semantics<arbitrary>], iteration_bounds = array<i64: 2, 1>, scalar_prefetch = 0 : i64, scratch_operands = 1 : i64, tpu.core_type = #tpu.core_type<tc>, window_params = [{transform_indices = @transform_0, window_bounds = array<i64: 1, 3, 2, 128>}, {transform_indices = @transform_1, window_bounds = array<i64: 1, 8, 128>}]} {
    %c0_i32 = arith.constant 0 : i32
    %0 = arith.cmpi eq, %arg1, %c0_i32 : i32
    %1 = arith.extui %0 : i1 to i32
    %c0_i32_0 = arith.constant 0 : i32
    %2 = arith.cmpi ne, %1, %c0_i32_0 : i32
    scf.if %2 {
      %cst_19 = arith.constant 0.000000e+00 : f32
      %25 = vector.broadcast %cst_19 : f32 to vector<1x128xf32>
      %c0_20 = arith.constant 0 : index
      %c0_21 = arith.constant 0 : index
      %26 = vector.load %arg4[%c0_20, %c0_21] : memref<1x128xf32, #tpu.memory_space<vmem>>, vector<1x128xf32>
      tpu.vector_store %arg4[%c0_20, %c0_21], %25 {strides = array<i32>} : memref<1x128xf32, #tpu.memory_space<vmem>>, vector<1x128xf32>,
    } else {
    }
    %c0 = arith.constant 0 : index
    %c0_1 = arith.constant 0 : index
    %c0_2 = arith.constant 0 : index
    %c0_3 = arith.constant 0 : index
    %3 = vector.load %arg2[%c0, %c0_1, %c0_2, %c0_3] : memref<1x3x2x128xf32, #tpu.memory_space<vmem>>, vector<1x1x2x128xf32>
    %4 = vector.shape_cast %3 : vector<1x1x2x128xf32> to vector<2x128xf32>
    %c0_4 = arith.constant 0 : index
    %c1 = arith.constant 1 : index
    %c0_5 = arith.constant 0 : index
    %c0_6 = arith.constant 0 : index
    %5 = vector.load %arg2[%c0_4, %c1, %c0_5, %c0_6] : memref<1x3x2x128xf32, #tpu.memory_space<vmem>>, vector<1x1x2x128xf32>
    %6 = vector.shape_cast %5 : vector<1x1x2x128xf32> to vector<2x128xf32>
    %c0_7 = arith.constant 0 : index
    %c2 = arith.constant 2 : index
    %c0_8 = arith.constant 0 : index
    %c0_9 = arith.constant 0 : index
    %7 = vector.load %arg2[%c0_7, %c2, %c0_8, %c0_9] : memref<1x3x2x128xf32, #tpu.memory_space<vmem>>, vector<1x1x2x128xf32>
    %8 = vector.shape_cast %7 : vector<1x1x2x128xf32> to vector<2x128xf32>
    %cst = arith.constant 2.989000e-01 : f32
    %9 = vector.broadcast %cst : f32 to vector<2x128xf32>
    %10 = arith.mulf %9, %4 : vector<2x128xf32>
    %cst_10 = arith.constant 5.870000e-01 : f32
    %11 = vector.broadcast %cst_10 : f32 to vector<2x128xf32>
    %12 = arith.mulf %11, %6 : vector<2x128xf32>
    %13 = arith.addf %10, %12 : vector<2x128xf32>
    %cst_11 = arith.constant 1.140000e-01 : f32
    %14 = vector.broadcast %cst_11 : f32 to vector<2x128xf32>
    %15 = arith.mulf %14, %8 : vector<2x128xf32>
    %16 = arith.addf %13, %15 : vector<2x128xf32>
    %c0_12 = arith.constant 0 : index
    %c0_13 = arith.constant 0 : index
    %17 = vector.load %arg4[%c0_12, %c0_13] : memref<1x128xf32, #tpu.memory_space<vmem>>, vector<1x128xf32>
    %cst_14 = arith.constant dense<0.000000e+00> : vector<128xf32>
    %18 = vector.multi_reduction <add>, %16, %cst_14 [0] : vector<2x128xf32> to vector<128xf32>
    %19 = vector.shape_cast %18 : vector<128xf32> to vector<1x128xf32>
    %20 = arith.addf %17, %19 : vector<1x128xf32>
    %c0_15 = arith.constant 0 : index
    %c0_16 = arith.constant 0 : index
    %21 = vector.load %arg4[%c0_15, %c0_16] : memref<1x128xf32, #tpu.memory_space<vmem>>, vector<1x128xf32>
    tpu.vector_store %arg4[%c0_15, %c0_16], %20 {strides = array<i32>} : memref<1x128xf32, #tpu.memory_space<vmem>>, vector<1x128xf32>,
    %c0_i32_17 = arith.constant 0 : i32
    %22 = arith.cmpi eq, %arg1, %c0_i32_17 : i32
    %23 = arith.extui %22 : i1 to i32
    %c0_i32_18 = arith.constant 0 : i32
    %24 = arith.cmpi ne, %23, %c0_i32_18 : i32
    scf.if %24 {
      %c0_19 = arith.constant 0 : index
      %c0_20 = arith.constant 0 : index
      %25 = vector.load %arg4[%c0_19, %c0_20] : memref<1x128xf32, #tpu.memory_space<vmem>>, vector<1x128xf32>
      %26 = vector.shape_cast %25 : vector<1x128xf32> to vector<1x1x128xf32>
      %cst_21 = arith.constant dense<0.000000e+00> : vector<1xf32>
      %27 = vector.multi_reduction <add>, %26, %cst_21 [1, 2] : vector<1x1x128xf32> to vector<1xf32>
      %28 = vector.shape_cast %27 : vector<1xf32> to vector<1x1x1xf32>
      %29 = vector.extract %28[0, 0, 0] : f32 from vector<1x1x1xf32>
      %cst_22 = arith.constant 3.906250e-03 : f32
      %30 = arith.mulf %29, %cst_22 : f32
      %31 = vector.broadcast %30 : f32 to vector<1x8x128xf32>
      %c0_23 = arith.constant 0 : index
      %c0_24 = arith.constant 0 : index
      %c0_25 = arith.constant 0 : index
      %32 = vector.load %arg3[%c0_23, %c0_24, %c0_25] : memref<1x8x128xf32, #tpu.memory_space<vmem>>, vector<1x8x128xf32>
      tpu.vector_store %arg3[%c0_23, %c0_24, %c0_25], %31 {strides = array<i32>} : memref<1x8x128xf32, #tpu.memory_space<vmem>>, vector<1x8x128xf32>,
    } else {
    }
    return
  }
  func.func @transform_0(%arg0: i32, %arg1: i32) -> (i32, i32, i32, i32) {
    %c0_i32 = arith.constant 0 : i32
    %c0_i32_0 = arith.constant 0 : i32
    %c0_i32_1 = arith.constant 0 : i32
    return %arg0, %c0_i32, %arg1, %c0_i32_0 : i32, i32, i32, i32
  }
  func.func @transform_1(%arg0: i32, %arg1: i32) -> (i32, i32, i32) {
    %c0_i32 = arith.constant 0 : i32
    %c0_i32_0 = arith.constant 0 : i32
    %c0_i32_1 = arith.constant 0 : i32
    return %arg0, %c0_i32, %c0_i32_0 : i32, i32, i32
  }
}

</mosaic_0001>

<bundles_post_ra>
// kernel: contrast_forward.2
= control target key start
LH: loop header
LB: loop body
LE: loop exit
PB: predicated region body
PF: predicated region fallthrough
CT: control target
= control target key end

     0   :  { %s323_s6 = smov 0   ;;  %s325_s7 = smov 0   ;;  %s360_s0 = inlined_call_operand.vmem [shape: f32[2,3,2,128], index: 0, kind: input, shape index: {}]   ;;  %s361_s1 = inlined_call_operand.vmem [shape: f32[2,8,128], index: 1, kind: output, shape index: {}]  }
   0x1   :  { %s327_s8 = smov 0  }
   0x2 LB: > { %s23_s9 = sadd.s32 1, %s306_s7  ;;  %p253_p0 = scmp.ge.s32.totalorder %s310_s8, 1  ;;  %s310_s8 = sphi %s327_s8, %s11_s8   ;;  %s306_s7 = sphi %s325_s7, %s363_s7   ;;  %s302_s6 = sphi %s323_s6, %s362_s6  }
   0x3   : > { %p25_p1 = scmp.ge.s32.totalorder %s23_s9, 2  ;;  %p104_p2 = scmp.lt.s32.totalorder %s310_s8, 3 }
   0x5   : > { %s365_s9 = smov (%p25_p1, %s23_s9), 0  ;;  %p105_p3 = pnand %p253_p0, %p104_p2 }
   0x6   : > { %p126_p4 = scmp.lt.s32.totalorder (!%p105_p3), %s302_s6, 1  ;;  %v312_v0 = vmov (!%p105_p3), 0.0   ;;  %vm154_vm0 = vcmask (!%p105_p3), 1041408   ;;  %vm168_vm1 = vcmask (!%p105_p3), 1040384  }
   0x7   : > { %108 = sbr.rel (%p105_p3) target bundleno = 257 (0x101), region = 24  ;;  %142 = vst [vmem:[#allocation2] sm:$0x1] (!%p105_p3), %v312_v0 }
   0xe   : > { %s367_s6 = smov (!%p126_p4, %s302_s6), 1  ;;  %v153_v15 = vld [vmem:[#allocation2] sm:$0x1] }
   0xf   : > { %s260_s10 = smul.u32 6, %s367_s6  ;;  %s255_s14 = sshll.u32 %s367_s6, 3 }
  0x10   : > { %s137_s18 = scalar_lea.vmem %s361_s1, %s255_s14 }
  0x11   : > { %s133_s13 = scalar_lea.vmem %s360_s0, %s260_s10 }
  0x12   : > { %v143_v1 = vld [vmem:[%s133_s13] sm:$0x3]  ;;  %v256_v2 = vld [vmem:[%s133_s13 + $0x2] sm:$0x3]  ;;  %v257_v3 = vld [vmem:[%s133_s13 + $0x4] sm:$0x3] }
  0x13   : > { %v148_v4 = vmul.f32 0.2989, %v143_v1  ;;  %v149_v5 = vmul.f32 0.587, %v256_v2  ;;  %v151_v6 = vmul.f32 0.114, %v257_v3 }
  0x15   : > { %v150_v7 = vadd.f32 %v149_v5, %v148_v4 }
  0x17   : > { %v152_v8 = vadd.f32 %v151_v6, %v150_v7 }
  0x19   : > { %v155_v9 = vsel %vm154_vm0, %v152_v8, 0.0 }
  0x1a   : > { %v156_v10 = vrot.slane %v155_v9, 4 }
  0x1c   : > { %v157_v11 = vadd.f32 %v156_v10, %v155_v9 }
  0x1e   : > { %v158_v12 = vrot.slane %v157_v11, 2 }
  0x20   : > { %v159_v13 = vadd.f32 %v158_v12, %v157_v11 }
  0x22   : > { %v160_v14 = vrot.slane %v159_v13, 1 }
  0x24   : > { %v161_v16 = vadd.f32 %v160_v14, %v159_v13 }
  0x26   : > { %v162_v17 = vadd.f32 %v161_v16, %v153_v15 }
  0x28   : > { %163 = vst [vmem:[#allocation2] sm:$0x1] %v162_v17 }
  0x2f   : > { %v167_v18 = vld [vmem:[#allocation2] sm:$0x1] }
  0x30   : > { %v169_v19 = vsel %vm168_vm1, %v167_v18, 0.0 }
  0x31   : > { %170 = vadd.xlane.f32.xlu0 %v169_v19 }
  0xbe   : > { %v171_v20 = vpop.xlane.xlu0 %170 }
  0xbf   : > { %v172_v21 = vrot.slane %v171_v20, 4 }
  0xc1   : > { %v173_v22 = vadd.f32 %v172_v21, %v171_v20 }
  0xc3   : > { %v174_v23 = vrot.slane %v173_v22, 2 }
  0xc5   : > { %v175_v24 = vadd.f32 %v174_v23, %v173_v22 }
  0xc7   : > { %v176_v25 = vrot.slane %v175_v24, 1 }
  0xc9   : > { %v177_v26 = vadd.f32 %v176_v25, %v175_v24 }
  0xcb   : > { %261 = vpush %v177_v26 }
  0xfc   : > { %s262_s15 = spop %261 }
  0xfd   : > { %s179_s19 = smul.f32 0.00390625, %s262_s15 }
  0xff   : > { %v180_v27 = vstv %s179_s19 }
 0x100   : > { %181 = vst [vmem:[%s137_s18] sm:$0xff] %v180_v27 }
 0x101 PF: > { %s11_s8 = sadd.s32 1, %s310_s8   ;;  %s362_s6 = smov %s306_s7 }
 0x102   : > { %p8_p5 = scmp.ge.s32.totalorder %s11_s8, 4   ;;  %s363_s7 = smov %s365_s9 }
 0x104   :  { %10 = sbr.rel (!%p8_p5) target bundleno = 2 (0x2), region = 64 }

// kernel: contrast_forward.3
= control target key start
LH: loop header
LB: loop body
LE: loop exit
PB: predicated region body
PF: predicated region fallthrough
CT: control target
= control target key end

     0   :  { %s511_s0 = inlined_call_operand.<no memory space> [shape: f32[1], index: 0, kind: input, shape index: {}]   ;;  %s512_s1 = inlined_call_operand.vmem [shape: f32[2], index: 1, kind: input, shape index: {}]   ;;  %s513_s2 = inlined_call_operand.vmem [shape: f32[2,3,2,128], index: 2, kind: input, shape index: {}]   ;;  %s514_s3 = inlined_call_operand.vmem [shape: f32[2,3,2,128], index: 3, kind: output, shape index: {}]  }
   0x1   :  { %8 = sst [smem:[#allocation2]] %s511_s0 }
   0x2   :  { %9 = vsyncpa [#allocation4], 0  ;;  %s451_s14 = smov 0   ;;  %s453_s15 = smov 0  }
   0x3   :  { %s455_s16 = smov 0  }
   0x4 LB: > { %s337_s0 = sadd.s32 4294967295, %s425_s16   ;;  %s27_s17 = sadd.s32 1, %s421_s15  ;;  %s425_s16 = sphi %s455_s16, %s15_s16   ;;  %s421_s15 = sphi %s453_s15, %s518_s15   ;;  %s417_s14 = sphi %s451_s14, %s517_s14  }
   0x5   : > { %p29_p0 = scmp.ge.s32.totalorder %s27_s17, 2  ;;  %p339_p1 = scmp.ge.s32.totalorder %s425_s16, 1 }
   0x6   : > { %p130_p2 = scmp.lt.s32.totalorder %s425_s16, 3  ;;  %p476_p4 = scmp.eq.s32.totalorder %s337_s0, 0 }
   0x7   : > { %s520_s17 = smov (%p29_p0, %s27_s17), 0  ;;  %s146_s22 = sshll.u32 %s512_s1, 4  ;;  %s147_s22 = int_to_ptr.vmem [resolvable:$true] %s146_s22 }
   0x8   : > { %p472_p3 = pnand %p339_p1, %p130_p2  ;;  %s384_s23 = scalar_lea.vmem %s147_s22, 16 }
   0x9   : > { %p385_p7 = scmp.ne.s32.totalorder %s147_s22, %s384_s23  ;;  %p392_p11 = scmp.lt.s32.totalorder %s147_s22, %s147_s22 }
   0xa   : > { %p353_p5 = pneg %p472_p3  ;;  %p393_p12 = scmp.lt.s32.totalorder %s384_s23, %s384_s23 }
   0xc   : > { %p354_p6 = pnand %p476_p4, %p353_p5  ;;  %p394_p13 = por %p393_p12, %p392_p11 }
   0xe   : > { %p386_p8 = pneg %p354_p6 }
  0x10   : > { %p387_p9 = pnand %p386_p8, %p385_p7 }
  0x12   : > { %p388_p10 = pneg %p387_p9 }
  0x14   : > { %p395_p0 = pnand %p394_p13, %p388_p10 }
  0x16   : > { %398 = shalt.err (!%p395_p0)
}
  0x17   : > { %s427_s24 = smov [#allocation3]   ;;  %170 = sbr.rel (%p472_p3) target bundleno = 52 (0x34), region = 32 }
  0x18   : > { %356 = dma.vmem_to_smem (!%p354_p6), %s147_s22, 16, %s427_s24, [#allocation4]  }
  0x1e   : > { %412 = dma.done.wait (%p476_p4), [#allocation4], 16  }
  0x1f   : > { %414 = vsyncadd (%p476_p4), [#allocation4], 4294967280 }
  0x20   : > { %176 = sfence }
  0x21   : > { %p201_p1 = scmp.lt.s32.totalorder %s417_s14, 1  ;;  %s217_s25 = sld [smem:[#allocation2]] }
  0x22   : > { %s219_s26 = sld [smem:[#allocation3 + %s417_s14]] }
  0x23   : > { %s522_s14 = smov (!%p201_p1, %s417_s14), 1 }
  0x24   : > { %s348_s27 = smul.u32 6, %s522_s14 }
  0x26   : > { %s208_s30 = scalar_lea.vmem %s513_s2, %s348_s27  ;;  %s216_s8 = scalar_lea.vmem %s514_s3, %s348_s27 }
  0x27   : > { %v224_v0 = vstv %s217_s25  ;;  %s218_s4 = ssub.f32 1.0, %s217_s25  ;;  %v221_v1 = vld [vmem:[%s208_s30] sm:$0x3]  ;;  %v222_v2 = vld [vmem:[%s208_s30 + $0x2] sm:$0x3] }
  0x28   : > { %v225_v3 = vmul.f32 %v224_v0, %v221_v1  ;;  %v226_v4 = vmul.f32 %v224_v0, %v222_v2  ;;  %v223_v5 = vld [vmem:[%s208_s30 + $0x4] sm:$0x3] }
  0x29   : > { %s220_s5 = smul.f32 %s219_s26, %s218_s4  ;;  %v227_v6 = vmul.f32 %v224_v0, %v223_v5 }
  0x2b   : > { %v228_v7 = vstv %s220_s5 }
  0x2c   : > { %v229_v8 = vadd.f32 %v228_v7, %v225_v3  ;;  %v230_v9 = vadd.f32 %v228_v7, %v226_v4  ;;  %v231_v10 = vadd.f32 %v228_v7, %v227_v6 }
  0x2e   : > { %v232_v11 = vmax.f32 %v229_v8, 0.0  ;;  %v233_v12 = vmax.f32 %v230_v9, 0.0  ;;  %v234_v13 = vmax.f32 %v231_v10, 0.0 }
  0x30   : > { %v235_v14 = vmin.f32 %v232_v11, 1.0  ;;  %v236_v15 = vmin.f32 %v233_v12, 1.0  ;;  %v237_v16 = vmin.f32 %v234_v13, 1.0 }
  0x32   : > { %238 = vst [vmem:[%s216_s8] sm:$0x3] %v235_v14  ;;  %239 = vst [vmem:[%s216_s8 + $0x2] sm:$0x3] %v236_v15 }
  0x33   : > { %240 = vst [vmem:[%s216_s8 + $0x4] sm:$0x3] %v237_v16 }
  0x34 PF: > { %s15_s16 = sadd.s32 1, %s425_s16   ;;  %s517_s14 = smov %s421_s15 }
  0x35   : > { %p12_p2 = scmp.ge.s32.totalorder %s15_s16, 4   ;;  %s518_s15 = smov %s520_s17 }
  0x37   :  { %14 = sbr.rel (!%p12_p2) target bundleno = 4 (0x4), region = 67 }
  0x3e   :  { %268 = vsyncpa [#allocation4], 1 }
  0x3f   :  { %270 = vsyncpa [#allocation4 + $0x1], 1 }

</bundles_post_ra>
